<compile_context>
chip_gen: v7x
topology: tpu7x:2x2x1
jax: 0.10.0
libtpu: 0.0.40
codegen_flags: <defaults>
</compile_context>

<pallas_src>
import math
import functools

import numpy as np
import jax
import jax.numpy as jnp
from jax.experimental import pallas as pl
from jax.experimental.pallas import tpu as pltpu

_MiB = 1024 * 1024


def _sdpa_kernel(q_ref, k_ref, v_ref, m_ref, o_ref, w_ref, kt_ref, vc_ref, *,
                 d_k, matmul_dtype, approx_recip):
    # Block shapes:
    #   q (G, TQ, D), k/v (G, S, D), mask (Gm, TQ, S) with Gm in {1, G},
    #   out (G, TQ, D), weights (G, TQ, S).
    # Scratch (persists across the q-tile axis): kt (G, D, S), vc (G, S, D).
    G = k_ref.shape[0]

    # Hoist per-head-group K/V preparation: cast (and transpose K) once per head
    # group instead of once per q tile.  Axis 1 is "arbitrary", so each core sees
    # t == 0 first for every head group it owns.
    @pl.when(pl.program_id(1) == 0)
    def _():
        for g in range(G):  # static unroll; 2-D transposes lower via the XLU
            kt_ref[g, :, :] = k_ref[g, :, :].T.astype(matmul_dtype)
        vc_ref[...] = v_ref[...].astype(matmul_dtype)

    # Fold 1/sqrt(d_k) into q (TQ*D multiplies instead of TQ*S).
    q = (q_ref[...] * (1.0 / math.sqrt(d_k))).astype(matmul_dtype)

    # scores = (q / sqrt(d_k)) @ k^T on the MXU with f32 accumulation.  K is already
    # transposed in scratch, so no per-step relayout is needed.
    scores = jnp.einsum("gqd,gdk->gqk", q, kt_ref[...],
                        preferred_element_type=jnp.float32)

    # masked_fill_(attn_mask, -1e9); int8 mask, nonzero == masked.  A head-shared
    # mask block has a leading dim of 1 and broadcasts over the packed heads.
    scores = jnp.where(m_ref[...] != 0, jnp.float32(-1.0e9), scores)

    # Numerically stable softmax over the key axis, kept in f32.
    row_max = jnp.max(scores, axis=-1, keepdims=True)
    exps = jnp.exp(scores - row_max)
    denom = jnp.sum(exps, axis=-1, keepdims=True)
    weights = exps * pl.reciprocal(denom, approx=approx_recip)

    # output = attn_weights @ v on the MXU (f32 accumulation).
    out = jnp.einsum("gqk,gkd->gqd", weights.astype(matmul_dtype), vc_ref[...],
                     preferred_element_type=jnp.float32)

    o_ref[...] = out.astype(o_ref.dtype)
    w_ref[...] = weights.astype(w_ref.dtype)


def _vmem_capacity_bytes():
    try:
        cap = int(pltpu.get_tpu_info().vmem_capacity_bytes)
        if cap > 0:
            return cap
    except Exception:
        pass
    return 64 * _MiB  # conservative default: v7x per-TensorCore


def _vmem_estimate(g, g_mask, tq, s, d, in_bytes, out_bytes, w_bytes, mm_bytes):
    # Double-buffered pipeline blocks (one buffer set):
    blocks = (g * tq * d * in_bytes            # q
              + 2 * g * s * d * in_bytes       # k, v (resident)
              + g_mask * tq * s                # int8 mask
              + g * tq * d * out_bytes         # out
              + g * tq * s * w_bytes)          # attn_weights
    # Persistent scratch (single-buffered): K^T and V in matmul dtype.
    scratch = 2 * g * s * d * mm_bytes
    # In-kernel temporaries: scores/exps/weights in f32 plus matmul-dtype copies.
    temps = g * tq * s * (3 * 4 + mm_bytes) + g * tq * d * (4 + mm_bytes)
    return 2 * blocks + scratch + temps


def _pick_tiles(bh, s, d, budget, mask_shared, in_bytes, out_bytes, w_bytes, mm_bytes):
    # q-tile candidates (multiples of 32 so int8/bf16 blocks tile cleanly);
    # for small S the whole query axis is a valid (full-dim) tile.
    if s <= 512:
        tq_cands = [s] + [t for t in (256, 128, 64) if t < s and s % t == 0]
    else:
        tq_cands = [512, 256, 128, 64]
    g_cands = [g for g in (16, 8, 4, 2, 1) if bh % g == 0]

    best = None
    for g in g_cands:
        gm = 1 if mask_shared else g
        for tq in tq_cands:
            if _vmem_estimate(g, gm, tq, s, d, in_bytes, out_bytes, w_bytes,
                              mm_bytes) <= budget:
                score = (g * tq, g)
                if best is None or score > best[0]:
                    best = (score, g, tq)
    if best is None:
        # TODO(synk): add a key-axis (online-softmax) tiling for very long sequences
        # where even (G=1, TQ=64) with full-S resident K/V exceeds the VMEM budget.
        return 1, min(tq_cands)
    return best[1], best[2]


def scaled_dot_product_attention(q, k, v, attn_mask, *, d_k=None,
                                 matmul_dtype=jnp.float32,
                                 approx_recip=False,
                                 weights_dtype=jnp.float32):
    """softmax(q @ k^T / sqrt(d_k), masked_fill(-1e9)) @ v.

    q, k, v:   [BH, S, D] (batch*heads flattened).
    attn_mask: [BH, S, S], [1, S, S] or [S, S]; truthy == masked.  A head-shared
               mask ([S,S]/[1,S,S]) is DMA'd once per head group.
    Fast options (explicit caller choice, since attn_weights is an output):
      matmul_dtype=jnp.bfloat16, approx_recip=True, weights_dtype=jnp.bfloat16.
    """
    BH, S, D = q.shape
    d_k = D if d_k is None else d_k

    if attn_mask.ndim == 2:
        attn_mask = attn_mask[None]
    mask_shared = attn_mask.shape[0] == 1
    if not mask_shared and attn_mask.shape[0] != BH:
        raise ValueError(f"attn_mask leading dim must be 1 or {BH}, got {attn_mask.shape}")
    mask_i8 = attn_mask.astype(jnp.int8)

    in_bytes = q.dtype.itemsize
    out_bytes = in_bytes
    w_bytes = np.dtype(weights_dtype).itemsize
    mm_bytes = np.dtype(matmul_dtype).itemsize

    # Generation-aware VMEM budgeting (128 MiB on v5e/v6e, 64 MiB per-TC on v7x).
    capacity = _vmem_capacity_bytes()
    if capacity >= 96 * _MiB:
        limit_cap = 56 * _MiB
    else:
        limit_cap = min(48 * _MiB, (3 * capacity) // 4)
    budget = max(limit_cap - 8 * _MiB, 4 * _MiB)

    G, TQ = _pick_tiles(BH, S, D, budget, mask_shared,
                        in_bytes, out_bytes, w_bytes, mm_bytes)
    GM = 1 if mask_shared else G

    # Pad only the query axis so TQ tiles it exactly; padded rows are sliced off.
    S_pad = -(-S // TQ) * TQ
    if S_pad != S:
        pad = ((0, 0), (0, S_pad - S), (0, 0))
        q = jnp.pad(q, pad)
        mask_i8 = jnp.pad(mask_i8, pad)

    kernel = functools.partial(_sdpa_kernel, d_k=d_k, matmul_dtype=matmul_dtype,
                               approx_recip=approx_recip)

    q_spec = pl.BlockSpec((G, TQ, D), lambda b, t: (b, t, 0))
    kv_spec = pl.BlockSpec((G, S, D), lambda b, t: (b, 0, 0))   # resident across q tiles
    if mask_shared:
        msk_spec = pl.BlockSpec((GM, TQ, S), lambda b, t: (0, t, 0))
    else:
        msk_spec = pl.BlockSpec((GM, TQ, S), lambda b, t: (b, t, 0))
    w_spec = pl.BlockSpec((G, TQ, S), lambda b, t: (b, t, 0))   # full key axis: lane-dense

    out, weights = pl.pallas_call(
        kernel,
        out_shape=(
            jax.ShapeDtypeStruct((BH, S_pad, D), q.dtype),
            jax.ShapeDtypeStruct((BH, S_pad, S), weights_dtype),
        ),
        grid_spec=pltpu.PrefetchScalarGridSpec(
            num_scalar_prefetch=0,
            grid=(BH // G, S_pad // TQ),
            in_specs=[q_spec, kv_spec, kv_spec, msk_spec],
            out_specs=[q_spec, w_spec],
            scratch_shapes=[pltpu.VMEM((G, D, S), matmul_dtype),   # K^T, cast once/group
                            pltpu.VMEM((G, S, D), matmul_dtype)],  # V,   cast once/group
        ),
        compiler_params=pltpu.CompilerParams(
            # Head-group axis "parallel": v7x megacore shards whole head groups so each
            # core keeps its own resident K/V.  q-tile axis "arbitrary": required for the
            # t==0 K/V-scratch hoist and avoids duplicate K/V DMA across cores.
            dimension_semantics=("parallel", "arbitrary"),
            vmem_limit_bytes=int(limit_cap),
        ),
    )(q, k, v, mask_i8)

    if S_pad != S:
        out = out[:, :S, :]
        weights = weights[:, :S, :]
    return out, weights


def _reference(q, k, v, attn_mask):
    d_k = q.shape[-1]
    scores = jnp.einsum("bqd,bkd->bqk", q, k) / math.sqrt(d_k)
    scores = jnp.where(attn_mask, -1.0e9, scores)
    w = jax.nn.softmax(scores, axis=-1)
    return jnp.einsum("bqk,bkd->bqd", w, v), w


if __name__ == "__main__":
    # Small shapes: batch=2, heads=2 (flattened to BH=4), seq=8, d_k=32.
    B, H, S, D = 2, 2, 8, 32
    BH = B * H

    key = jax.random.PRNGKey(0)
    kq, kk, kv, km, km2 = jax.random.split(key, 5)
    q = jax.random.normal(kq, (BH, S, D), dtype=jnp.float32)
    k = jax.random.normal(kk, (BH, S, D), dtype=jnp.float32)
    v = jax.random.normal(kv, (BH, S, D), dtype=jnp.float32)

    # Per-(batch*head) boolean mask (True == masked); keep >= 1 unmasked key per row.
    attn_mask = jax.random.bernoulli(km, p=0.25, shape=(BH, S, S))
    attn_mask = attn_mask.at[:, :, 0].set(False)

    # Default (accurate) path: f32 MXU matmuls, exact reciprocal, f32 weights.
    ref_out, ref_w = _reference(q, k, v, attn_mask)
    out, w = scaled_dot_product_attention(q, k, v, attn_mask)
    out = jax.block_until_ready(out)
    w = jax.block_until_ready(w)
    assert jnp.allclose(out, ref_out, atol=1e-4, rtol=1e-4), "f32 output mismatch"
    assert jnp.allclose(w, ref_w, atol=1e-4, rtol=1e-4), "f32 weights mismatch"

    # Fast path (explicit opt-in): bf16 MXU matmuls, EUP reciprocal, bf16 weights,
    # and a head-shared [S, S] mask (DMA'd once per head group).
    shared_mask = jax.random.bernoulli(km2, p=0.25, shape=(S, S))
    shared_mask = shared_mask.at[:, 0].set(False)
    ref_out2, ref_w2 = _reference(q, k, v, jnp.broadcast_to(shared_mask, (BH, S, S)))
    out2, w2 = scaled_dot_product_attention(
        q, k, v, shared_mask,
        matmul_dtype=jnp.bfloat16, approx_recip=True, weights_dtype=jnp.bfloat16)
    out2 = jax.block_until_ready(out2)
    w2 = jax.block_until_ready(w2)
    assert jnp.allclose(out2, ref_out2, atol=3e-2, rtol=3e-2), "bf16 output mismatch"
    assert jnp.allclose(w2.astype(jnp.float32), ref_w2, atol=3e-2, rtol=3e-2), \
        "bf16 weights mismatch"

    print("KERNEL_OK")
</pallas_src>

<mosaic_0001>
module attributes {stable_mosaic.version = 11 : i64} {
  func.func @_sdpa_kernel(%arg0: i32, %arg1: i32, %arg2: memref<4x8x32xf32, #tpu.memory_space<vmem>>, %arg3: memref<4x8x32xf32, #tpu.memory_space<vmem>>, %arg4: memref<4x8x32xf32, #tpu.memory_space<vmem>>, %arg5: memref<4x8x8xi8, #tpu.memory_space<vmem>>, %arg6: memref<4x8x32xf32, #tpu.memory_space<vmem>>, %arg7: memref<4x8x8xf32, #tpu.memory_space<vmem>>, %arg8: memref<4x32x8xf32, #tpu.memory_space<vmem>>, %arg9: memref<4x8x32xf32, #tpu.memory_space<vmem>>) attributes {dimension_semantics = [#tpu.dimension_semantics<parallel>, #tpu.dimension_semantics<arbitrary>], iteration_bounds = array<i64: 1, 1>, scalar_prefetch = 0 : i64, scratch_operands = 2 : i64, tpu.core_type = #tpu.core_type<tc>, window_params = [{transform_indices = @transform_0, window_bounds = array<i64: 4, 8, 32>}, {transform_indices = @transform_1, window_bounds = array<i64: 4, 8, 32>}, {transform_indices = @transform_2, window_bounds = array<i64: 4, 8, 32>}, {transform_indices = @transform_3, window_bounds = array<i64: 4, 8, 8>}, {transform_indices = @transform_4, window_bounds = array<i64: 4, 8, 32>}, {transform_indices = @transform_5, window_bounds = array<i64: 4, 8, 8>}]} {
    %c0_i32 = arith.constant 0 : i32
    %0 = arith.cmpi eq, %arg1, %c0_i32 : i32
    %1 = arith.extui %0 : i1 to i32
    %c0_i32_0 = arith.constant 0 : i32
    %2 = arith.cmpi ne, %1, %c0_i32_0 : i32
    scf.if %2 {
      %c0_23 = arith.constant 0 : index
      %c0_24 = arith.constant 0 : index
      %c0_25 = arith.constant 0 : index
      %27 = vector.load %arg3[%c0_23, %c0_24, %c0_25] : memref<4x8x32xf32, #tpu.memory_space<vmem>>, vector<1x8x32xf32>
      %28 = vector.shape_cast %27 : vector<1x8x32xf32> to vector<8x32xf32>
      %29 = tpu.transpose %28, [1, 0] : vector<8x32xf32> -> vector<32x8xf32>
      %c0_26 = arith.constant 0 : index
      %c0_27 = arith.constant 0 : index
      %c0_28 = arith.constant 0 : index
      %30 = vector.load %arg8[%c0_26, %c0_27, %c0_28] : memref<4x32x8xf32, #tpu.memory_space<vmem>>, vector<1x32x8xf32>
      %31 = vector.shape_cast %30 : vector<1x32x8xf32> to vector<32x8xf32>
      %32 = vector.shape_cast %29 : vector<32x8xf32> to vector<1x32x8xf32>
      tpu.vector_store %arg8[%c0_26, %c0_27, %c0_28], %32 {strides = array<i32>} : memref<4x32x8xf32, #tpu.memory_space<vmem>>, vector<1x32x8xf32>,
      %c1 = arith.constant 1 : index
      %c0_29 = arith.constant 0 : index
      %c0_30 = arith.constant 0 : index
      %33 = vector.load %arg3[%c1, %c0_29, %c0_30] : memref<4x8x32xf32, #tpu.memory_space<vmem>>, vector<1x8x32xf32>
      %34 = vector.shape_cast %33 : vector<1x8x32xf32> to vector<8x32xf32>
      %35 = tpu.transpose %34, [1, 0] : vector<8x32xf32> -> vector<32x8xf32>
      %c1_31 = arith.constant 1 : index
      %c0_32 = arith.constant 0 : index
      %c0_33 = arith.constant 0 : index
      %36 = vector.load %arg8[%c1_31, %c0_32, %c0_33] : memref<4x32x8xf32, #tpu.memory_space<vmem>>, vector<1x32x8xf32>
      %37 = vector.shape_cast %36 : vector<1x32x8xf32> to vector<32x8xf32>
      %38 = vector.shape_cast %35 : vector<32x8xf32> to vector<1x32x8xf32>
      tpu.vector_store %arg8[%c1_31, %c0_32, %c0_33], %38 {strides = array<i32>} : memref<4x32x8xf32, #tpu.memory_space<vmem>>, vector<1x32x8xf32>,
      %c2 = arith.constant 2 : index
      %c0_34 = arith.constant 0 : index
      %c0_35 = arith.constant 0 : index
      %39 = vector.load %arg3[%c2, %c0_34, %c0_35] : memref<4x8x32xf32, #tpu.memory_space<vmem>>, vector<1x8x32xf32>
      %40 = vector.shape_cast %39 : vector<1x8x32xf32> to vector<8x32xf32>
      %41 = tpu.transpose %40, [1, 0] : vector<8x32xf32> -> vector<32x8xf32>
      %c2_36 = arith.constant 2 : index
      %c0_37 = arith.constant 0 : index
      %c0_38 = arith.constant 0 : index
      %42 = vector.load %arg8[%c2_36, %c0_37, %c0_38] : memref<4x32x8xf32, #tpu.memory_space<vmem>>, vector<1x32x8xf32>
      %43 = vector.shape_cast %42 : vector<1x32x8xf32> to vector<32x8xf32>
      %44 = vector.shape_cast %41 : vector<32x8xf32> to vector<1x32x8xf32>
      tpu.vector_store %arg8[%c2_36, %c0_37, %c0_38], %44 {strides = array<i32>} : memref<4x32x8xf32, #tpu.memory_space<vmem>>, vector<1x32x8xf32>,
      %c3 = arith.constant 3 : index
      %c0_39 = arith.constant 0 : index
      %c0_40 = arith.constant 0 : index
      %45 = vector.load %arg3[%c3, %c0_39, %c0_40] : memref<4x8x32xf32, #tpu.memory_space<vmem>>, vector<1x8x32xf32>
      %46 = vector.shape_cast %45 : vector<1x8x32xf32> to vector<8x32xf32>
      %47 = tpu.transpose %46, [1, 0] : vector<8x32xf32> -> vector<32x8xf32>
      %c3_41 = arith.constant 3 : index
      %c0_42 = arith.constant 0 : index
      %c0_43 = arith.constant 0 : index
      %48 = vector.load %arg8[%c3_41, %c0_42, %c0_43] : memref<4x32x8xf32, #tpu.memory_space<vmem>>, vector<1x32x8xf32>
      %49 = vector.shape_cast %48 : vector<1x32x8xf32> to vector<32x8xf32>
      %50 = vector.shape_cast %47 : vector<32x8xf32> to vector<1x32x8xf32>
      tpu.vector_store %arg8[%c3_41, %c0_42, %c0_43], %50 {strides = array<i32>} : memref<4x32x8xf32, #tpu.memory_space<vmem>>, vector<1x32x8xf32>,
      %c0_44 = arith.constant 0 : index
      %c0_45 = arith.constant 0 : index
      %c0_46 = arith.constant 0 : index
      %51 = vector.load %arg4[%c0_44, %c0_45, %c0_46] : memref<4x8x32xf32, #tpu.memory_space<vmem>>, vector<4x8x32xf32>
      %c0_47 = arith.constant 0 : index
      %c0_48 = arith.constant 0 : index
      %c0_49 = arith.constant 0 : index
      %52 = vector.load %arg9[%c0_47, %c0_48, %c0_49] : memref<4x8x32xf32, #tpu.memory_space<vmem>>, vector<4x8x32xf32>
      tpu.vector_store %arg9[%c0_47, %c0_48, %c0_49], %51 {strides = array<i32>} : memref<4x8x32xf32, #tpu.memory_space<vmem>>, vector<4x8x32xf32>,
    } else {
    }
    %c0 = arith.constant 0 : index
    %c0_1 = arith.constant 0 : index
    %c0_2 = arith.constant 0 : index
    %3 = vector.load %arg2[%c0, %c0_1, %c0_2] : memref<4x8x32xf32, #tpu.memory_space<vmem>>, vector<4x8x32xf32>
    %cst = arith.constant 0.176776692 : f32
    %4 = vector.broadcast %cst : f32 to vector<4x8x32xf32>
    %5 = arith.mulf %3, %4 : vector<4x8x32xf32>
    %c0_3 = arith.constant 0 : index
    %c0_4 = arith.constant 0 : index
    %c0_5 = arith.constant 0 : index
    %6 = vector.load %arg8[%c0_3, %c0_4, %c0_5] : memref<4x32x8xf32, #tpu.memory_space<vmem>>, vector<4x32x8xf32>
    "tpu.trace_start"() <{level = 10 : i32, message = "gqd,gdk->gqk"}> : () -> ()
    %cst_6 = arith.constant dense<0.000000e+00> : vector<4x8x8xf32>
    %7 = tpu.matmul %5, %6, %cst_6 {dimension_numbers = #tpu.dot_dimension_numbers<[2], [1], [1], [2], [0, 0, 0, 1, 1, 2], [0], [0]>} : vector<4x8x32xf32>, vector<4x32x8xf32>, vector<4x8x8xf32> -> vector<4x8x8xf32>
    "tpu.trace_stop"() : () -> ()
    %c0_7 = arith.constant 0 : index
    %c0_8 = arith.constant 0 : index
    %c0_9 = arith.constant 0 : index
    %8 = vector.load %arg5[%c0_7, %c0_8, %c0_9] : memref<4x8x8xi8, #tpu.memory_space<vmem>>, vector<4x8x8xi8>
    %c0_i8 = arith.constant 0 : i8
    %9 = vector.broadcast %c0_i8 : i8 to vector<4x8x8xi8>
    %10 = arith.cmpi ne, %8, %9 : vector<4x8x8xi8>
    %cst_10 = arith.constant -1.000000e+09 : f32
    %11 = vector.broadcast %cst_10 : f32 to vector<4x8x8xf32>
    %12 = arith.select %10, %11, %7 : vector<4x8x8xi1>, vector<4x8x8xf32>
    %cst_11 = arith.constant dense<0xFF800000> : vector<4x8xf32>
    %13 = vector.multi_reduction <maximumf>, %12, %cst_11 [2] : vector<4x8x8xf32> to vector<4x8xf32>
    %14 = vector.shape_cast %13 : vector<4x8xf32> to vector<4x8x1xf32>
    %15 = vector.broadcast %14 : vector<4x8x1xf32> to vector<4x8x8xf32>
    %16 = arith.subf %12, %15 : vector<4x8x8xf32>
    %17 = math.exp %16 : vector<4x8x8xf32>
    %cst_12 = arith.constant dense<0.000000e+00> : vector<4x8xf32>
    %18 = vector.multi_reduction <add>, %17, %cst_12 [2] : vector<4x8x8xf32> to vector<4x8xf32>
    %19 = vector.shape_cast %18 : vector<4x8xf32> to vector<4x8x1xf32>
    %20 = tpu.reciprocal %19 : vector<4x8x1xf32> -> vector<4x8x1xf32>
    %21 = vector.broadcast %20 : vector<4x8x1xf32> to vector<4x8x8xf32>
    %22 = arith.mulf %17, %21 : vector<4x8x8xf32>
    %c0_13 = arith.constant 0 : index
    %c0_14 = arith.constant 0 : index
    %c0_15 = arith.constant 0 : index
    %23 = vector.load %arg9[%c0_13, %c0_14, %c0_15] : memref<4x8x32xf32, #tpu.memory_space<vmem>>, vector<4x8x32xf32>
    "tpu.trace_start"() <{level = 10 : i32, message = "gqk,gkd->gqd"}> : () -> ()
    %cst_16 = arith.constant dense<0.000000e+00> : vector<4x8x32xf32>
    %24 = tpu.matmul %22, %23, %cst_16 {dimension_numbers = #tpu.dot_dimension_numbers<[2], [1], [1], [2], [0, 0, 0, 1, 1, 2], [0], [0]>} : vector<4x8x8xf32>, vector<4x8x32xf32>, vector<4x8x32xf32> -> vector<4x8x32xf32>
    "tpu.trace_stop"() : () -> ()
    %c0_17 = arith.constant 0 : index
    %c0_18 = arith.constant 0 : index
    %c0_19 = arith.constant 0 : index
    %25 = vector.load %arg6[%c0_17, %c0_18, %c0_19] : memref<4x8x32xf32, #tpu.memory_space<vmem>>, vector<4x8x32xf32>
    tpu.vector_store %arg6[%c0_17, %c0_18, %c0_19], %24 {strides = array<i32>} : memref<4x8x32xf32, #tpu.memory_space<vmem>>, vector<4x8x32xf32>,
    %c0_20 = arith.constant 0 : index
    %c0_21 = arith.constant 0 : index
    %c0_22 = arith.constant 0 : index
    %26 = vector.load %arg7[%c0_20, %c0_21, %c0_22] : memref<4x8x8xf32, #tpu.memory_space<vmem>>, vector<4x8x8xf32>
    tpu.vector_store %arg7[%c0_20, %c0_21, %c0_22], %22 {strides = array<i32>} : memref<4x8x8xf32, #tpu.memory_space<vmem>>, vector<4x8x8xf32>,
    return
  }
  func.func @transform_0(%arg0: i32, %arg1: i32) -> (i32, i32, i32) {
    %c0_i32 = arith.constant 0 : i32
    %c0_i32_0 = arith.constant 0 : i32
    return %arg0, %arg1, %c0_i32 : i32, i32, i32
  }
  func.func @transform_1(%arg0: i32, %arg1: i32) -> (i32, i32, i32) {
    %c0_i32 = arith.constant 0 : i32
    %c0_i32_0 = arith.constant 0 : i32
    %c0_i32_1 = arith.constant 0 : i32
    return %arg0, %c0_i32, %c0_i32_0 : i32, i32, i32
  }
  func.func @transform_2(%arg0: i32, %arg1: i32) -> (i32, i32, i32) {
    %c0_i32 = arith.constant 0 : i32
    %c0_i32_0 = arith.constant 0 : i32
    %c0_i32_1 = arith.constant 0 : i32
    return %arg0, %c0_i32, %c0_i32_0 : i32, i32, i32
  }
  func.func @transform_3(%arg0: i32, %arg1: i32) -> (i32, i32, i32) {
    %c0_i32 = arith.constant 0 : i32
    %c0_i32_0 = arith.constant 0 : i32
    return %arg0, %arg1, %c0_i32 : i32, i32, i32
  }
  func.func @transform_4(%arg0: i32, %arg1: i32) -> (i32, i32, i32) {
    %c0_i32 = arith.constant 0 : i32
    %c0_i32_0 = arith.constant 0 : i32
    return %arg0, %arg1, %c0_i32 : i32, i32, i32
  }
  func.func @transform_5(%arg0: i32, %arg1: i32) -> (i32, i32, i32) {
    %c0_i32 = arith.constant 0 : i32
    %c0_i32_0 = arith.constant 0 : i32
    return %arg0, %arg1, %c0_i32 : i32, i32, i32
  }
}

</mosaic_0001>

<bundles_post_ra>
// kernel: tpu_custom_call.1
= control target key start
LH: loop header
LB: loop body
LE: loop exit
PB: predicated region body
PF: predicated region fallthrough
CT: control target
= control target key end

     0   :  { %11 = vsyncpa [#allocation5], 0  ;;  %s1432_s0 = inlined_call_operand.hbm [shape: f32[4,8,32], index: 0, kind: input, shape index: {}]   ;;  %s1433_s1 = inlined_call_operand.hbm [shape: f32[4,8,32], index: 1, kind: input, shape index: {}]   ;;  %s1434_s2 = inlined_call_operand.hbm [shape: f32[4,8,32], index: 2, kind: input, shape index: {}]   ;;  %s1435_s3 = inlined_call_operand.vmem [shape: s8[4,8,8], index: 3, kind: input, shape index: {}]   ;;  %s1436_s4 = inlined_call_operand.hbm [shape: f32[4,8,32], index: 4, kind: output, shape index: {0}]   ;;  %s1437_s5 = inlined_call_operand.hbm [shape: f32[4,8,8], index: 5, kind: output, shape index: {1}]  }
   0x1   :  { %12 = vsyncpa [#allocation8], 0 }
   0x2   :  { %13 = vsyncpa [#allocation6], 0 }
   0x3   :  { %14 = vsyncpa [#allocation12], 0  ;;  %s1225_s18 = smov [#allocation7]   ;;  %s1226_s20 = smov [#allocation4]  }
   0x4   :  { %s32_s19 = sshll.u32 %s1225_s18, 4  ;;  %s20_s21 = sshll.u32 %s1226_s20, 4  ;;  %s33_s19 = int_to_ptr.vmem [resolvable:$true] %s32_s19  ;;  %s1266_s21 = int_to_ptr.vmem [resolvable:$true] %s20_s21 }
   0x5   :  { %s1107_s24 = scalar_lea.hbm %s1433_s1, 512 }
   0x6   :  { %p1108_p0 = scmp.ne.s32.totalorder %s1433_s1, %s1107_s24  ;;  %p1111_p1 = scmp.lt.u32.totalorder %s1107_s24, %s1433_s1 }
   0x8   :  { %p1113_p2 = pnand %p1111_p1, %p1108_p0 }
   0xa   :  { %1116 = shalt.err (!%p1113_p2)
}
   0xb   :  { %s1117_s29 = scalar_lea.vmem %s33_s19, 512  ;;  %p1122_p4 = scmp.lt.s32.totalorder %s33_s19, %s33_s19 }
   0xc   :  { %p1118_p3 = scmp.ne.s32.totalorder %s33_s19, %s1117_s29  ;;  %p1123_p5 = scmp.lt.s32.totalorder %s1117_s29, %s1117_s29 }
   0xe   :  { %p1124_p6 = por %p1123_p5, %p1122_p4 }
  0x10   :  { %p1125_p7 = pnand %p1124_p6, %p1118_p3 }
  0x12   :  { %1128 = shalt.err (!%p1125_p7)
}
  0x13   :  { %s1227_s30 = smov 128   ;;  %s1228_s6 = smov 8  }
  0x14   :  { %38 = dma.hbm_to_vmem [thread:$0]  %s1433_s1, 512, %s33_s19, [#allocation8], %s1227_s30, %s1227_s30, %s1228_s6  }
  0x15   :  { %s1129_s11 = scalar_lea.hbm %s1432_s0, 512 }
  0x16   :  { %p1130_p8 = scmp.ne.s32.totalorder %s1432_s0, %s1129_s11  ;;  %p1133_p9 = scmp.lt.u32.totalorder %s1129_s11, %s1432_s0 }
  0x18   :  { %p1135_p10 = pnand %p1133_p9, %p1130_p8 }
  0x1a   :  { %1138 = shalt.err (!%p1135_p10)
}
  0x1b   :  { %s1139_s16 = scalar_lea.vmem %s1266_s21, 512  ;;  %p1144_p12 = scmp.lt.s32.totalorder %s1266_s21, %s1266_s21 }
  0x1c   :  { %p1140_p11 = scmp.ne.s32.totalorder %s1266_s21, %s1139_s16  ;;  %p1145_p13 = scmp.lt.s32.totalorder %s1139_s16, %s1139_s16 }
  0x1e   :  { %p1146_p0 = por %p1145_p13, %p1144_p12 }
  0x20   :  { %p1147_p1 = pnand %p1146_p0, %p1140_p11 }
  0x22   :  { %1150 = shalt.err (!%p1147_p1)
}
  0x23   :  { %26 = dma.hbm_to_vmem [thread:$0]  %s1432_s0, 512, %s1266_s21, [#allocation5], %s1227_s30, %s1227_s30, %s1228_s6  }
  0x24   :  { %s1229_s18 = smov [#allocation9]   ;;  %s1151_s23 = scalar_lea.hbm %s1434_s2, 512 }
  0x25   :  { %s44_s19 = sshll.u32 %s1229_s18, 4  ;;  %p1152_p2 = scmp.ne.s32.totalorder %s1434_s2, %s1151_s23  ;;  %s45_s19 = int_to_ptr.vmem [resolvable:$true] %s44_s19 }
  0x26   :  { %p1155_p3 = scmp.lt.u32.totalorder %s1151_s23, %s1434_s2 }
  0x28   :  { %p1157_p4 = pnand %p1155_p3, %p1152_p2 }
  0x2a   :  { %1160 = shalt.err (!%p1157_p4)
}
  0x2b   :  { %s1161_s28 = scalar_lea.vmem %s45_s19, 512  ;;  %p1166_p6 = scmp.lt.s32.totalorder %s45_s19, %s45_s19 }
  0x2c   :  { %p1162_p5 = scmp.ne.s32.totalorder %s45_s19, %s1161_s28  ;;  %p1167_p7 = scmp.lt.s32.totalorder %s1161_s28, %s1161_s28 }
  0x2e   :  { %p1168_p8 = por %p1167_p7, %p1166_p6 }
  0x30   :  { %p1169_p9 = pnand %p1168_p8, %p1162_p5 }
  0x32   :  { %1172 = shalt.err (!%p1169_p9)
}
  0x33   :  { %50 = dma.hbm_to_vmem [thread:$0]  %s1434_s2, 512, %s45_s19, [#allocation8], %s1227_s30, %s1227_s30, %s1228_s6  }
  0x34   :  { %1217 = dma.done.wait [#allocation5], 512  }
  0x35   :  { %1218 = vsyncadd [#allocation5], 4294966784 }
  0x36   :  { %1219 = dma.done.wait [#allocation8], 1024  }
  0x37   :  { %1220 = vsyncadd [#allocation8], 4294966272  ;;  %v68_v0 = vld [vmem:[#allocation7] sm:$0xff]  ;;  %v146_v1 = vld [vmem:[#allocation7 + $0x10] sm:$0xff]  ;;  %v1230_v4 = vmov 0.0|0.0   ;;  %vm1231_vm0 = vmmov 0  }
  0x38   :  { %69 = vxpose.xlu0.b32.start.end [1/1] (short) (narrow) %v68_v0, 32  ;;  %147 = vxpose.xlu1.b32.start.end [1/1] (short) (narrow) %v146_v1, 32  ;;  %v107_v2 = vld [vmem:[#allocation7 + $0x8] sm:$0xff]  ;;  %v185_v3 = vld [vmem:[#allocation7 + $0x18] sm:$0xff]  ;;  %v1232_v5 = vmov 0.0   ;;  %vm101_vm1 = vcmask 64512  }
  0x39   :  { %1056 = vmatprep.subr.bf16.mxu0 %v1230_v4  ;;  %1062 = vmatprep.subr.bf16.mxu1 %v1230_v4  ;;  %v232_v19 = vld [vmem:[#allocation4] sm:$0xff]  ;;  %vm227_vm2 = vcmask 261120   ;;  %v234_v33 = vld [vmem:[#allocation4 + $0x10] sm:$0xff]  ;;  %v233_v41 = vld [vmem:[#allocation4 + $0x8] sm:$0xff]  ;;  %v1233_v55 = vmov 0  }
  0x3a   :  { %1000 = vmatprep.mubr.msk.f32.mxu0 %vm1231_vm0, %v1232_v5  ;;  %1011 = vmatprep.mubr.msk.f32.mxu1 %vm1231_vm0, %v1232_v5  ;;  %v236_v25 = vmul.f32 0.17677669, %v232_v19  ;;  %v238_v40 = vmul.f32 0.17677669, %v234_v33  ;;  %v237_v45 = vmul.f32 0.17677669, %v233_v41 }
  0x3b   :  { %v235_v51 = vld [vmem:[#allocation4 + $0x18] sm:$0xff]  ;;  %v549_v54 = vld [vmem:[%s1435_s3] sm:$0x3]  ;;  %v550_v59 = vld [vmem:[%s1435_s3 + $0x2] sm:$0x3] }
  0x3c   :  { %v239_v53 = vmul.f32 0.17677669, %v235_v51  ;;  %vm553_vm3 = vnez %v549_v54  ;;  %v551_v62 = vld [vmem:[%s1435_s3 + $0x4] sm:$0x3]  ;;  %vm554_vm5 = vnez %v550_v59 }
  0x3d   :  { %v557_v56 = vsel %vm553_vm3, 16843009, %v1233_v55  ;;  %vm555_vm6 = vnez %v551_v62  ;;  %v558_v0 = vsel %vm554_vm5, 16843009, %v1233_v55 }
  0x3e   :  { %v561_v57 = vunpack.c.0.s8 %v557_v56  ;;  %v559_v1 = vsel %vm555_vm6, 16843009, %v1233_v55 }
  0x40   :  { %vm565_vm4 = vcmp.ne.s32.totalorder %v561_v57, 0 }
  0x45   :  { %108 = vxpose.xlu0.b32.start.end [1/1] (short) (narrow) %v107_v2, 32  ;;  %186 = vxpose.xlu1.b32.start.end [1/1] (short) (narrow) %v185_v3, 32 }
  0xb8   :  { %v85_v6 = vpop.trf.xlu0  ;;  %v163_v7 = vpop.trf.xlu1 }
  0xb9   :  { %102 = vst.msk [vmem:[#allocation2] sm:$0xff] %vm101_vm1, %v85_v6  ;;  %180 = vst.msk [vmem:[#allocation2 + $0x40] sm:$0xff] %vm101_vm1, %v163_v7  ;;  %v562_v6 = vunpack.c.0.s8 %v558_v0  ;;  %v563_v7 = vunpack.c.0.s8 %v559_v1 }
  0xbb   :  { %vm566_vm8 = vcmp.ne.s32.totalorder %v562_v6, 0  ;;  %vm567_vm9 = vcmp.ne.s32.totalorder %v563_v7, 0 }
  0xbc   :  { %v86_v8 = vpop.trf.xlu0  ;;  %v164_v9 = vpop.trf.xlu1 }
  0xbd   :  { %103 = vst.msk [vmem:[#allocation2 + $0x8] sm:$0xff] %vm101_vm1, %v86_v8  ;;  %181 = vst.msk [vmem:[#allocation2 + $0x48] sm:$0xff] %vm101_vm1, %v164_v9 }
  0xc0   :  { %v87_v10 = vpop.trf.xlu0  ;;  %v165_v11 = vpop.trf.xlu1  ;;  %v240_v13 = vld [vmem:[#allocation2] sm:$0xff] }
  0xc1   :  { %104 = vst.msk [vmem:[#allocation2 + $0x10] sm:$0xff] %vm101_vm1, %v87_v10  ;;  %182 = vst.msk [vmem:[#allocation2 + $0x50] sm:$0xff] %vm101_vm1, %v165_v11  ;;  %v248_v26 = vld [vmem:[#allocation2 + $0x40] sm:$0xff] }
  0xc4   :  { %v88_v12 = vpop.trf.xlu0  ;;  %v241_v14 = vld [vmem:[#allocation2 + $0x8] sm:$0xff]  ;;  %v166_v15 = vpop.trf.xlu1 }
  0xc5   :  { %105 = vst.msk [vmem:[#allocation2 + $0x18] sm:$0xff] %vm101_vm1, %v88_v12  ;;  %v1057_v16 = vpack.c.bf16 %v241_v14, %v240_v13  ;;  %183 = vst.msk [vmem:[#allocation2 + $0x58] sm:$0xff] %vm101_vm1, %v166_v15  ;;  %v249_v27 = vld [vmem:[#allocation2 + $0x48] sm:$0xff] }
  0xc6   :  { %v1069_v30 = vpack.c.bf16 %v249_v27, %v248_v26 }
  0xc7   :  { %1058 = vmatpush3.bf16.msra.mxu0 %v1057_v16 }
  0xc8   :  { %v124_v17 = vpop.trf.xlu0  ;;  %v202_v18 = vpop.trf.xlu1  ;;  %1059 = vmatprep.subr.bf16.mxu0 %v1230_v4  ;;  %v242_v21 = vld [vmem:[#allocation2 + $0x10] sm:$0xff] }
  0xc9   :  { %141 = vst.msk [vmem:[#allocation2 + $0x20] sm:$0xff] %vm101_vm1, %v124_v17  ;;  %219 = vst.msk [vmem:[#allocation2 + $0x60] sm:$0xff] %vm101_vm1, %v202_v18  ;;  %v250_v31 = vld [vmem:[#allocation2 + $0x50] sm:$0xff] }
  0xcc   :  { %v125_v20 = vpop.trf.xlu0  ;;  %v243_v22 = vld [vmem:[#allocation2 + $0x18] sm:$0xff]  ;;  %v203_v23 = vpop.trf.xlu1 }
  0xcd   :  { %142 = vst.msk [vmem:[#allocation2 + $0x28] sm:$0xff] %vm101_vm1, %v125_v20  ;;  %v1060_v24 = vpack.c.bf16 %v243_v22, %v242_v21  ;;  %220 = vst.msk [vmem:[#allocation2 + $0x68] sm:$0xff] %vm101_vm1, %v203_v23  ;;  %v251_v32 = vld [vmem:[#allocation2 + $0x58] sm:$0xff] }
  0xce   :  { %v1072_v39 = vpack.c.bf16 %v251_v32, %v250_v31 }
  0xcf   :  { %1061 = vmatpush3.bf16.msra.mxu0 %v1060_v24 }
  0xd0   :  { %v126_v28 = vpop.trf.xlu0  ;;  %1068 = vmatprep.subr.bf16.mxu0 %v1230_v4  ;;  %v204_v29 = vpop.trf.xlu1  ;;  %v244_v35 = vld [vmem:[#allocation2 + $0x20] sm:$0xff] }
  0xd1   :  { %143 = vst.msk [vmem:[#allocation2 + $0x30] sm:$0xff] %vm101_vm1, %v126_v28  ;;  %221 = vst.msk [vmem:[#allocation2 + $0x70] sm:$0xff] %vm101_vm1, %v204_v29  ;;  %v252_v46 = vld [vmem:[#allocation2 + $0x60] sm:$0xff] }
  0xd2   :  { %1001 = vmatmul.mubr.msk.f32.vlgmr.msra.gmra.mrb[0].mxu0 %vm227_vm2, %v236_v25 }
  0xd3   :  { %1070 = vmatpush3.bf16.msra.mxu0 %v1069_v30  ;;  %1022 = vmatprep.mubr.msk.f32.mxu0 %vm1231_vm0, %v1232_v5 }
  0xd4   :  { %v127_v34 = vpop.trf.xlu0  ;;  %1071 = vmatprep.subr.bf16.mxu0 %v1230_v4  ;;  %v245_v36 = vld [vmem:[#allocation2 + $0x28] sm:$0xff]  ;;  %v205_v37 = vpop.trf.xlu1 }
  0xd5   :  { %144 = vst.msk [vmem:[#allocation2 + $0x38] sm:$0xff] %vm101_vm1, %v127_v34  ;;  %v1063_v38 = vpack.c.bf16 %v245_v36, %v244_v35  ;;  %222 = vst.msk [vmem:[#allocation2 + $0x78] sm:$0xff] %vm101_vm1, %v205_v37  ;;  %v253_v47 = vld [vmem:[#allocation2 + $0x68] sm:$0xff]  ;;  %v223_v36 = vld [vmem:[#allocation9] sm:$0xff] }
  0xd6   :  { %v1075_v48 = vpack.c.bf16 %v253_v47, %v252_v46  ;;  %228 = vst.msk [vmem:[#allocation3] sm:$0xff] %vm227_vm2, %v223_v36 }
  0xd7   :  { %1064 = vmatpush3.bf16.msra.mxu1 %v1063_v38  ;;  %1073 = vmatpush3.bf16.msra.mxu0 %v1072_v39 }
  0xd8   :  { %1065 = vmatprep.subr.bf16.mxu1 %v1230_v4  ;;  %1036 = vmatprep.subr.mxu0 %v1232_v5  ;;  %v246_v42 = vld [vmem:[#allocation2 + $0x30] sm:$0xff] }
  0xd9   :  { %v254_v49 = vld [vmem:[#allocation2 + $0x70] sm:$0xff] }
  0xda   :  { %1023 = vmatmul.mubr.msk.f32.vlgmr.msra.gmra.mrb[2].mxu0 %vm227_vm2, %v238_v40 }
  0xdb   :  { %1038 = vmatprep.mubr.msk.f32.mxu0 %vm1231_vm0, %v1232_v5 }
  0xdc   :  { %v247_v43 = vld [vmem:[#allocation2 + $0x38] sm:$0xff] }
  0xdd   :  { %v1066_v44 = vpack.c.bf16 %v247_v43, %v246_v42  ;;  %v255_v50 = vld [vmem:[#allocation2 + $0x78] sm:$0xff]  ;;  %v618_v41 = vld [vmem:[#allocation3] sm:$0xff]  ;;  %v224_v42 = vld [vmem:[#allocation9 + $0x8] sm:$0xff] }
  0xde   :  { %v1078_v52 = vpack.c.bf16 %v255_v50, %v254_v49  ;;  %1037 = vmatpush3.msra.mxu0 %v618_v41  ;;  %229 = vst.msk [vmem:[#allocation3 + $0x8] sm:$0xff] %vm227_vm2, %v224_v42  ;;  %v225_v43 = vld [vmem:[#allocation9 + $0x10] sm:$0xff] }
  0xdf   :  { %1067 = vmatpush3.bf16.msra.mxu1 %v1066_v44  ;;  %1046 = vmatprep.subr.mxu0 %v1232_v5  ;;  %230 = vst.msk [vmem:[#allocation3 + $0x10] sm:$0xff] %vm227_vm2, %v225_v43 }
  0xe0   :  { %1074 = vmatprep.subr.bf16.mxu1 %v1230_v4 }
  0xe2   :  { %1012 = vmatmul.mubr.msk.f32.vlgmr.msra.gmra.mrb[0].mxu1 %vm227_vm2, %v237_v45  ;;  %v226_v45 = vld [vmem:[#allocation9 + $0x18] sm:$0xff] }
  0xe3   :  { %1076 = vmatpush3.bf16.msra.mxu1 %v1075_v48  ;;  %1033 = vmatprep.mubr.msk.f32.mxu1 %vm1231_vm0, %v1232_v5  ;;  %231 = vst.msk [vmem:[#allocation3 + $0x18] sm:$0xff] %vm227_vm2, %v226_v45 }
  0xe4   :  { %1077 = vmatprep.subr.bf16.mxu1 %v1230_v4  ;;  %v552_v4 = vld [vmem:[%s1435_s3 + $0x6] sm:$0x3]  ;;  %s1234_s3 = smov [#allocation11]  }
  0xe5   :  { %vm556_vm7 = vnez %v552_v4  ;;  %v619_v44 = vld [vmem:[#allocation3 + $0x8] sm:$0xff]  ;;  %s939_s13 = sshll.u32 %s1234_s3, 4  ;;  %s940_s13 = int_to_ptr.vmem [resolvable:$true] %s939_s13 }
  0xe6   :  { %v560_v8 = vsel %vm556_vm7, 16843009, %v1233_v55  ;;  %v620_v49 = vld [vmem:[#allocation3 + $0x10] sm:$0xff]  ;;  %s1173_s14 = scalar_lea.vmem %s940_s13, 512  ;;  %p1178_p11 = scmp.lt.s32.totalorder %s940_s13, %s940_s13 }
  0xe7   :  { %1079 = vmatpush3.bf16.msra.mxu1 %v1078_v52  ;;  %v564_v14 = vunpack.c.0.s8 %v560_v8  ;;  %p1174_p10 = scmp.ne.s32.totalorder %s940_s13, %s1173_s14  ;;  %p1179_p12 = scmp.lt.s32.totalorder %s1173_s14, %s1173_s14 }
  0xe8   :  { %1041 = vmatprep.subr.mxu1 %v1232_v5 }
  0xe9   :  { %vm568_vm10 = vcmp.ne.s32.totalorder %v564_v14, 0  ;;  %p1180_p13 = por %p1179_p12, %p1178_p11 }
  0xea   :  { %1034 = vmatmul.mubr.msk.f32.vlgmr.msra.gmra.mrb[2].mxu1 %vm227_vm2, %v239_v53  ;;  %v621_v55 = vld [vmem:[#allocation3 + $0x18] sm:$0xff] }
  0xeb   :  { %1043 = vmatprep.mubr.msk.f32.mxu1 %vm1231_vm0, %v1232_v5  ;;  %1042 = vmatpush3.msra.mxu1 %v619_v44  ;;  %p1181_p0 = pnand %p1180_p13, %p1174_p10 }
  0xec   :  { %1051 = vmatprep.subr.mxu1 %v1232_v5 }
 0x1a5   :  { %v326_v58 = vpop.f32.mrb[0].mxu0 }
 0x1a6   :  { %v569_v60 = vsel %vm565_vm4, -1e+09, %v326_v58  ;;  %v1002_v61 = vpop.f32.mrb[1].mxu0 }
 0x1a7   :  { %v574_v63 = vsel %vm101_vm1, %v569_v60, -inf }
 0x1a8   :  { %575 = vmax.xlane.f32.xlu0 %v574_v63 }
 0x1ad   :  { %v472_v2 = vpop.f32.mrb[2].mxu0 }
 0x1ae   :  { %v1024_v3 = vpop.f32.mrb[3].mxu0  ;;  %v571_v12 = vsel %vm567_vm9, -1e+09, %v472_v2 }
 0x1af   :  { %v580_v15 = vsel %vm101_vm1, %v571_v12, -inf }
 0x1b5   :  { %v399_v9 = vpop.f32.mrb[0].mxu1 }
 0x1b6   :  { %v570_v10 = vsel %vm566_vm8, -1e+09, %v399_v9  ;;  %v1013_v11 = vpop.f32.mrb[1].mxu1 }
 0x1b7   :  { %v577_v13 = vsel %vm101_vm1, %v570_v10, -inf }
 0x1b8   :  { %578 = vmax.xlane.f32.xlu1 %v577_v13 }
 0x1bc   :  { %581 = vmax.xlane.f32.xlu1 %v580_v15 }
 0x1bd   :  { %v545_v16 = vpop.f32.mrb[2].mxu1 }
 0x1be   :  { %v572_v17 = vsel %vm568_vm10, -1e+09, %v545_v16  ;;  %v1035_v18 = vpop.f32.mrb[3].mxu1 }
 0x1bf   :  { %v583_v19 = vsel %vm101_vm1, %v572_v17, -inf }
 0x1c0   :  { %584 = vmax.xlane.f32.xlu1 %v583_v19 }
 0x235   :  { %v576_v20 = vpop.xlane.xlu0 %575 }
 0x236   :  { %v586_v21 = vsub.f32 %v569_v60, %v576_v20 }
 0x238   :  { %v590_v22 = vmul.f32 1.442695, %v586_v21 }
 0x23a   :  { %1091 = vpow2.f32 %v590_v22 }
 0x244   :  { %v1092_v23 = vpop.eup %1091 }
 0x245   :  { %v579_v24 = vpop.xlane.xlu1 %578  ;;  %v598_v25 = vsel %vm101_vm1, %v1092_v23, 0.0 }
 0x246   :  { %v587_v26 = vsub.f32 %v570_v10, %v579_v24  ;;  %599 = vadd.xlane.f32.xlu0 %v598_v25 }
 0x248   :  { %v592_v27 = vmul.f32 1.442695, %v587_v26 }
 0x249   :  { %v582_v28 = vpop.xlane.xlu1 %581 }
 0x24a   :  { %1093 = vpow2.f32 %v592_v27  ;;  %v588_v29 = vsub.f32 %v571_v12, %v582_v28 }
 0x24c   :  { %v594_v30 = vmul.f32 1.442695, %v588_v29 }
 0x24d   :  { %v585_v31 = vpop.xlane.xlu1 %584 }
 0x24e   :  { %1095 = vpow2.f32 %v594_v30  ;;  %v589_v32 = vsub.f32 %v572_v17, %v585_v31 }
 0x250   :  { %v596_v33 = vmul.f32 1.442695, %v589_v32 }
 0x252   :  { %1097 = vpow2.f32 %v596_v33 }
 0x254   :  { %v1094_v34 = vpop.eup %1093 }
 0x255   :  { %v601_v35 = vsel %vm101_vm1, %v1094_v34, 0.0 }
 0x256   :  { %602 = vadd.xlane.f32.xlu1 %v601_v35 }
 0x258   :  { %v1096_v37 = vpop.eup %1095 }
 0x259   :  { %v604_v38 = vsel %vm101_vm1, %v1096_v37, 0.0 }
 0x25a   :  { %605 = vadd.xlane.f32.xlu0 %v604_v38 }
 0x25c   :  { %v1098_v39 = vpop.eup %1097 }
 0x25d   :  { %v607_v40 = vsel %vm101_vm1, %v1098_v39, 0.0 }
 0x25e   :  { %608 = vadd.xlane.f32.xlu1 %v607_v40 }
 0x2d3   :  { %v600_v46 = vpop.xlane.xlu0 %599 }
 0x2d4   :  { %1099 = vrcp.f32 %v600_v46 }
 0x2de   :  { %v1100_v47 = vpop.eup %1099 }
 0x2df   :  { %v614_v48 = vmul.f32 %v1100_v47, %v1092_v23 }
 0x2e1   :  { %918 = vst.msk [vmem:[#allocation11] sm:$0xff] %vm101_vm1, %v614_v48  ;;  %1039 = vmatmul.mubr.msk.f32.vlgmr.msra.gmra.mrb[4].mxu0 %vm101_vm1, %v614_v48 }
 0x2e2   :  { %1047 = vmatpush3.msra.mxu0 %v620_v49  ;;  %1048 = vmatprep.mubr.msk.f32.mxu0 %vm1231_vm0, %v1232_v5 }
 0x2e3   :  { %v603_v50 = vpop.xlane.xlu1 %602 }
 0x2e4   :  { %1101 = vrcp.f32 %v603_v50 }
 0x2e7   :  { %v606_v51 = vpop.xlane.xlu0 %605 }
 0x2e8   :  { %1103 = vrcp.f32 %v606_v51 }
 0x2eb   :  { %v609_v52 = vpop.xlane.xlu1 %608 }
 0x2ec   :  { %1105 = vrcp.f32 %v609_v52 }
 0x2ee   :  { %v1102_v53 = vpop.eup %1101 }
 0x2ef   :  { %v615_v54 = vmul.f32 %v1102_v53, %v1094_v34 }
 0x2f1   :  { %919 = vst.msk [vmem:[#allocation11 + $0x8] sm:$0xff] %vm101_vm1, %v615_v54  ;;  %1044 = vmatmul.mubr.msk.f32.vlgmr.msra.gmra.mrb[4].mxu1 %vm101_vm1, %v615_v54 }
 0x2f2   :  { %v1104_v56 = vpop.eup %1103  ;;  %1052 = vmatpush3.msra.mxu1 %v621_v55  ;;  %1053 = vmatprep.mubr.msk.f32.mxu1 %vm1231_vm0, %v1232_v5 }
 0x2f3   :  { %v616_v57 = vmul.f32 %v1104_v56, %v1096_v37 }
 0x2f5   :  { %920 = vst.msk [vmem:[#allocation11 + $0x10] sm:$0xff] %vm101_vm1, %v616_v57  ;;  %1049 = vmatmul.mubr.msk.f32.vlgmr.msra.gmra.mrb[6].mxu0 %vm101_vm1, %v616_v57 }
 0x2f6   :  { %v1106_v58 = vpop.eup %1105 }
 0x2f7   :  { %v617_v59 = vmul.f32 %v1106_v58, %v1098_v39 }
 0x2f9   :  { %921 = vst.msk [vmem:[#allocation11 + $0x18] sm:$0xff] %vm101_vm1, %v617_v59  ;;  %1054 = vmatmul.mubr.msk.f32.vlgmr.msra.gmra.mrb[6].mxu1 %vm101_vm1, %v617_v59 }
 0x2fa   :  { %1184 = shalt.err (!%p1181_p0)
}
 0x2fb   :  { %s1185_s1 = scalar_lea.hbm %s1437_s5, 512 }
 0x2fc   :  { %p1186_p1 = scmp.ne.s32.totalorder %s1437_s5, %s1185_s1  ;;  %p1189_p2 = scmp.lt.u32.totalorder %s1185_s1, %s1437_s5 }
 0x2fe   :  { %p1191_p3 = pnand %p1189_p2, %p1186_p1 }
 0x300   :  { %1194 = shalt.err (!%p1191_p3)
}
 0x301   :  { %945 = dma.vmem_to_hbm [thread:$0]  %s940_s13, 512, %s1437_s5, [#allocation12], %s1227_s30, %s1227_s30, %s1228_s6  }
 0x302   :  { %s1235_s24 = smov [#allocation10]  }
 0x303   :  { %s927_s25 = sshll.u32 %s1235_s24, 4  ;;  %s928_s25 = int_to_ptr.vmem [resolvable:$true] %s927_s25 }
 0x304   :  { %s1195_s5 = scalar_lea.vmem %s928_s25, 512  ;;  %p1200_p5 = scmp.lt.s32.totalorder %s928_s25, %s928_s25 }
 0x305   :  { %p1196_p4 = scmp.ne.s32.totalorder %s928_s25, %s1195_s5  ;;  %p1201_p6 = scmp.lt.s32.totalorder %s1195_s5, %s1195_s5 }
 0x307   :  { %p1202_p7 = por %p1201_p6, %p1200_p5 }
 0x309   :  { %p1203_p8 = pnand %p1202_p7, %p1196_p4 }
 0x3b4   :  { %v691_v5 = vpop.f32.mrb[4].mxu0 }
 0x3b5   :  { %914 = vst.msk [vmem:[#allocation10] sm:$0xff] %vm227_vm2, %v691_v5  ;;  %v1040_v60 = vpop.f32.mrb[5].mxu0 }
 0x3c4   :  { %v764_v61 = vpop.f32.mrb[4].mxu1 }
 0x3c5   :  { %915 = vst.msk [vmem:[#allocation10 + $0x8] sm:$0xff] %vm227_vm2, %v764_v61  ;;  %v1045_v62 = vpop.f32.mrb[5].mxu1 }
 0x3c8   :  { %v837_v63 = vpop.f32.mrb[6].mxu0 }
 0x3c9   :  { %916 = vst.msk [vmem:[#allocation10 + $0x10] sm:$0xff] %vm227_vm2, %v837_v63  ;;  %v1050_v0 = vpop.f32.mrb[7].mxu0 }
 0x3cc   :  { %v910_v1 = vpop.f32.mrb[6].mxu1 }
 0x3cd   :  { %917 = vst.msk [vmem:[#allocation10 + $0x18] sm:$0xff] %vm227_vm2, %v910_v1  ;;  %v1055_v2 = vpop.f32.mrb[7].mxu1 }
 0x3ce   :  { %1206 = shalt.err (!%p1203_p8)
}
 0x3cf   :  { %s1207_s28 = scalar_lea.hbm %s1436_s4, 512 }
 0x3d0   :  { %p1208_p9 = scmp.ne.s32.totalorder %s1436_s4, %s1207_s28  ;;  %p1211_p10 = scmp.lt.u32.totalorder %s1207_s28, %s1436_s4 }
 0x3d2   :  { %p1213_p11 = pnand %p1211_p10, %p1208_p9 }
 0x3d4   :  { %1216 = shalt.err (!%p1213_p11)
}
 0x3d5   :  { %933 = dma.vmem_to_hbm [thread:$0]  %s928_s25, 512, %s1436_s4, [#allocation6], %s1227_s30, %s1227_s30, %s1228_s6  }
 0x3d6   :  { %1221 = dma.done.wait [#allocation6], 512  }
 0x3d7   :  { %1222 = vsyncadd [#allocation6], 4294966784 }
 0x3d8   :  { %1223 = dma.done.wait [#allocation12], 512  }
 0x3d9   :  { %1224 = vsyncadd [#allocation12], 4294966784 }
 0x3da   :  { %952 = vsyncpa [#allocation5], 1 }
 0x3db   :  { %953 = vsyncpa [#allocation8], 1 }
 0x3dc   :  { %954 = vsyncpa [#allocation6], 1 }
 0x3dd   :  { %955 = vsyncpa [#allocation12], 1 }

</bundles_post_ra>
